<compile_context>
chip_gen: v7x
topology: tpu7x:2x2x1
jax: 0.10.0
libtpu: 0.0.40
codegen_flags: <defaults>
</compile_context>

<pallas_src>
import functools

import jax
import jax.numpy as jnp
from jax.experimental import pallas as pl
from jax.experimental.pallas import tpu as pltpu

_COLS = 512                  # lane-dense slab width (4 x 128 lanes)
_TROW = 512                  # rows per block -> 512*512*4B = 1 MiB blocks
_SMALL_LIMIT = 512 * 1024    # elements; at or below this use the fused 1-pass path


def _cdiv(a, b):
    return -(-a // b)


def _round_up(a, m):
    return _cdiv(a, m) * m


# ------------------ fused single-block kernel (small inputs) -----------------
def _fused_kernel(x_ref, t_ref, o_ref, *, inv_total):
    x = x_ref[...]
    d = x - t_ref[...]
    mse = jnp.sum(d * d) * inv_total            # zero-padded tail contributes 0
    r = jnp.maximum(jnp.abs(x) - 1.0, 0.0)
    o_ref[...] = mse + 10.0 * (r * r)


# ------------------ pass 1: global sum of squared diffs -> MSE ---------------
def _mse_kernel(x_ref, t_ref, mse_ref, acc_ref, *, inv_total):
    i = pl.program_id(0)

    @pl.when(i == 0)
    def _():
        acc_ref[...] = jnp.zeros_like(acc_ref)

    d = x_ref[...] - t_ref[...]
    acc_ref[...] += d * d                       # pure VPU per step, hides under DMA

    @pl.when(i == pl.num_programs(0) - 1)
    def _():
        # single cross-lane (XLU) reduce at the very end; mean divide folded in.
        mse_ref[0, 0] = jnp.sum(acc_ref[...]) * inv_total


# ------------------ pass 2: elementwise hinge + broadcast add ----------------
def _hinge_kernel(mse_ref, x_ref, o_ref):
    mse = mse_ref[0, 0]
    r = jnp.maximum(jnp.abs(x_ref[...]) - 1.0, 0.0)
    o_ref[...] = mse + 10.0 * (r * r)


def mse_with_hinge_loss(x, t):
    assert x.shape == t.shape
    orig_shape = x.shape
    orig_dtype = x.dtype
    total = x.size
    inv_total = 1.0 / float(total)

    xf = jnp.ravel(x).astype(jnp.float32)
    tf = jnp.ravel(t).astype(jnp.float32)

    if total <= _SMALL_LIMIT:
        # ---- single fused pass: whole (padded) slab resident in VMEM ----
        padded = _round_up(total, 8 * _COLS)
        if padded != total:
            xf = jnp.pad(xf, (0, padded - total))
            tf = jnp.pad(tf, (0, padded - total))
        rows = padded // _COLS
        x2d = xf.reshape(rows, _COLS)
        t2d = tf.reshape(rows, _COLS)

        out2d = pl.pallas_call(
            functools.partial(_fused_kernel, inv_total=inv_total),
            out_shape=jax.ShapeDtypeStruct((rows, _COLS), jnp.float32),
        )(x2d, t2d)
    else:
        # ---- two-pass pipeline with 1 MiB lane-dense blocks ----
        rows_needed = _cdiv(total, _COLS)
        n_blocks = _cdiv(rows_needed, _TROW)
        trow = _round_up(_cdiv(rows_needed, n_blocks), 8)
        rows = n_blocks * trow
        padded = rows * _COLS
        if padded != total:
            xf = jnp.pad(xf, (0, padded - total))
            tf = jnp.pad(tf, (0, padded - total))
        x2d = xf.reshape(rows, _COLS)
        t2d = tf.reshape(rows, _COLS)

        # Pass 1: MSE (already divided by the true element count) in SMEM.
        mse = pl.pallas_call(
            functools.partial(_mse_kernel, inv_total=inv_total),
            out_shape=jax.ShapeDtypeStruct((1, 1), jnp.float32),
            grid_spec=pltpu.PrefetchScalarGridSpec(
                num_scalar_prefetch=0,
                grid=(n_blocks,),
                in_specs=[
                    pl.BlockSpec((trow, _COLS), lambda i: (i, 0)),
                    pl.BlockSpec((trow, _COLS), lambda i: (i, 0)),
                ],
                out_specs=pl.BlockSpec(
                    (1, 1), lambda i: (0, 0), memory_space=pltpu.SMEM
                ),
                scratch_shapes=[pltpu.VMEM((trow, _COLS), jnp.float32)],
            ),
            compiler_params=pltpu.CompilerParams(
                dimension_semantics=("arbitrary",)
            ),
        )(x2d, t2d)

        # Pass 2: elementwise hinge + broadcast add of the SMEM scalar.
        out2d = pl.pallas_call(
            _hinge_kernel,
            out_shape=jax.ShapeDtypeStruct((rows, _COLS), jnp.float32),
            grid_spec=pltpu.PrefetchScalarGridSpec(
                num_scalar_prefetch=0,
                grid=(n_blocks,),
                in_specs=[
                    pl.BlockSpec((1, 1), lambda i: (0, 0), memory_space=pltpu.SMEM),
                    pl.BlockSpec((trow, _COLS), lambda i: (i, 0)),
                ],
                out_specs=pl.BlockSpec((trow, _COLS), lambda i: (i, 0)),
            ),
            compiler_params=pltpu.CompilerParams(
                dimension_semantics=("parallel",)
            ),
        )(mse, x2d)

    out = out2d.reshape(-1)[:total].reshape(orig_shape)
    return out.astype(orig_dtype)


def _reference(x, t):
    loss1 = jnp.mean((x - t) ** 2)
    loss2 = jnp.maximum(x - 1.0, 0.0) ** 2
    loss3 = jnp.maximum(-x - 1.0, 0.0) ** 2
    return loss1 + 10.0 * (loss2 + loss3)


if __name__ == "__main__":
    key = jax.random.PRNGKey(0)
    k1, k2 = jax.random.split(key)

    # Small NCHW input (module's typical usage) -> fused single-pass path.
    x = jax.random.normal(k1, (2, 4, 16, 16), dtype=jnp.float32) * 2.0
    t = jax.random.normal(k2, (2, 4, 16, 16), dtype=jnp.float32)
    out = jax.block_until_ready(mse_with_hinge_loss(x, t))
    ref = _reference(x, t)
    assert out.shape == x.shape
    assert jnp.allclose(out, ref, atol=1e-5, rtol=1e-5), float(
        jnp.max(jnp.abs(out - ref))
    )

    # Larger input -> exercises the two-pass, big-block pipeline.
    k3, k4 = jax.random.split(k1)
    xl = jax.random.normal(k3, (4, 16, 128, 128), dtype=jnp.float32) * 2.0
    tl = jax.random.normal(k4, (4, 16, 128, 128), dtype=jnp.float32)
    outl = jax.block_until_ready(mse_with_hinge_loss(xl, tl))
    refl = _reference(xl, tl)
    assert outl.shape == xl.shape
    assert jnp.allclose(outl, refl, atol=1e-4, rtol=1e-4), float(
        jnp.max(jnp.abs(outl - refl))
    )

    print("KERNEL_OK")
</pallas_src>

<mosaic_0001>
module attributes {stable_mosaic.version = 11 : i64} {
  func.func @_fused_kernel(%arg0: memref<8x512xf32, #tpu.memory_space<vmem>>, %arg1: memref<8x512xf32, #tpu.memory_space<vmem>>, %arg2: memref<8x512xf32, #tpu.memory_space<vmem>>) attributes {dimension_semantics = [], scalar_prefetch = 0 : i64, scratch_operands = 0 : i64, tpu.core_type = #tpu.core_type<tc>} {
    %c0 = arith.constant 0 : index
    %c0_0 = arith.constant 0 : index
    %0 = vector.load %arg0[%c0, %c0_0] : memref<8x512xf32, #tpu.memory_space<vmem>>, vector<8x512xf32>
    %c0_1 = arith.constant 0 : index
    %c0_2 = arith.constant 0 : index
    %1 = vector.load %arg1[%c0_1, %c0_2] : memref<8x512xf32, #tpu.memory_space<vmem>>, vector<8x512xf32>
    %2 = arith.subf %0, %1 : vector<8x512xf32>
    %3 = arith.mulf %2, %2 : vector<8x512xf32>
    %4 = vector.shape_cast %3 : vector<8x512xf32> to vector<1x8x512xf32>
    %cst = arith.constant dense<0.000000e+00> : vector<1xf32>
    %5 = vector.multi_reduction <add>, %4, %cst [1, 2] : vector<1x8x512xf32> to vector<1xf32>
    %6 = vector.shape_cast %5 : vector<1xf32> to vector<1x1x1xf32>
    %7 = vector.extract %6[0, 0, 0] : f32 from vector<1x1x1xf32>
    %cst_3 = arith.constant 4.8828125E-4 : f32
    %8 = arith.mulf %7, %cst_3 : f32
    %9 = math.absf %0 : vector<8x512xf32>
    %cst_4 = arith.constant 1.000000e+00 : f32
    %10 = vector.broadcast %cst_4 : f32 to vector<8x512xf32>
    %11 = arith.subf %9, %10 : vector<8x512xf32>
    %cst_5 = arith.constant 0.000000e+00 : f32
    %12 = vector.broadcast %cst_5 : f32 to vector<8x512xf32>
    %13 = arith.maximumf %11, %12 : vector<8x512xf32>
    %14 = arith.mulf %13, %13 : vector<8x512xf32>
    %cst_6 = arith.constant 1.000000e+01 : f32
    %15 = vector.broadcast %cst_6 : f32 to vector<8x512xf32>
    %16 = arith.mulf %15, %14 : vector<8x512xf32>
    %17 = vector.broadcast %8 : f32 to vector<8x512xf32>
    %18 = arith.addf %17, %16 : vector<8x512xf32>
    %c0_7 = arith.constant 0 : index
    %c0_8 = arith.constant 0 : index
    %19 = vector.load %arg2[%c0_7, %c0_8] : memref<8x512xf32, #tpu.memory_space<vmem>>, vector<8x512xf32>
    tpu.vector_store %arg2[%c0_7, %c0_8], %18 {strides = array<i32>} : memref<8x512xf32, #tpu.memory_space<vmem>>, vector<8x512xf32>,
    return
  }
}

</mosaic_0001>

<bundles_post_ra>
// kernel: tpu_custom_call.1
= control target key start
LH: loop header
LB: loop body
LE: loop exit
PB: predicated region body
PF: predicated region fallthrough
CT: control target
= control target key end

     0   :  { %7 = vsyncpa [#allocation3], 0  ;;  %s245_s0 = inlined_call_operand.hbm [shape: f32[8,512], index: 0, kind: input, shape index: {}]   ;;  %s246_s1 = inlined_call_operand.hbm [shape: f32[8,512], index: 1, kind: input, shape index: {}]   ;;  %s247_s2 = inlined_call_operand.hbm [shape: f32[8,512], index: 2, kind: output, shape index: {}]  }
   0x1   :  { %8 = vsyncpa [#allocation6], 0 }
   0x2   :  { %9 = vsyncpa [#allocation4], 0  ;;  %s191_s9 = smov [#allocation2]   ;;  %s192_s11 = smov [#allocation5]  }
   0x3   :  { %s16_s10 = sshll.u32 %s191_s9, 4  ;;  %s26_s12 = sshll.u32 %s192_s11, 4  ;;  %s17_s10 = int_to_ptr.vmem [resolvable:$true] %s16_s10  ;;  %s27_s12 = int_to_ptr.vmem [resolvable:$true] %s26_s12 }
   0x4   :  { %s119_s15 = scalar_lea.hbm %s245_s0, 512 }
   0x5   :  { %p120_p0 = scmp.ne.s32.totalorder %s245_s0, %s119_s15  ;;  %p123_p1 = scmp.lt.u32.totalorder %s119_s15, %s245_s0 }
   0x7   :  { %p125_p2 = pnand %p123_p1, %p120_p0 }
   0x9   :  { %128 = shalt.err (!%p125_p2)
}
   0xa   :  { %s129_s20 = scalar_lea.vmem %s17_s10, 512  ;;  %p134_p4 = scmp.lt.s32.totalorder %s17_s10, %s17_s10 }
   0xb   :  { %p130_p3 = scmp.ne.s32.totalorder %s17_s10, %s129_s20  ;;  %p135_p5 = scmp.lt.s32.totalorder %s129_s20, %s129_s20 }
   0xd   :  { %p136_p6 = por %p135_p5, %p134_p4 }
   0xf   :  { %p137_p7 = pnand %p136_p6, %p130_p3 }
  0x11   :  { %140 = shalt.err (!%p137_p7)
}
  0x12   :  { %19 = dma.hbm_to_vmem [thread:$0]  %s245_s0, 512, %s17_s10, [#allocation3]  }
  0x13   :  { %s141_s25 = scalar_lea.hbm %s246_s1, 512 }
  0x14   :  { %p142_p8 = scmp.ne.s32.totalorder %s246_s1, %s141_s25  ;;  %p145_p9 = scmp.lt.u32.totalorder %s141_s25, %s246_s1 }
  0x16   :  { %p147_p10 = pnand %p145_p9, %p142_p8 }
  0x18   :  { %150 = shalt.err (!%p147_p10)
}
  0x19   :  { %s151_s30 = scalar_lea.vmem %s27_s12, 512  ;;  %p156_p12 = scmp.lt.s32.totalorder %s27_s12, %s27_s12 }
  0x1a   :  { %p152_p11 = scmp.ne.s32.totalorder %s27_s12, %s151_s30  ;;  %p157_p13 = scmp.lt.s32.totalorder %s151_s30, %s151_s30 }
  0x1c   :  { %p158_p0 = por %p157_p13, %p156_p12 }
  0x1e   :  { %p159_p1 = pnand %p158_p0, %p152_p11 }
  0x20   :  { %162 = shalt.err (!%p159_p1)
}
  0x21   :  { %29 = dma.hbm_to_vmem [thread:$0]  %s246_s1, 512, %s27_s12, [#allocation6]  }
  0x22   :  { %185 = dma.done.wait [#allocation3], 512  }
  0x23   :  { %186 = vsyncadd [#allocation3], 4294966784 }
  0x24   :  { %187 = dma.done.wait [#allocation6], 512  }
  0x25   :  { %188 = vsyncadd [#allocation6], 4294966784  ;;  %v36_v0 = vld [vmem:[#allocation2] sm:$0xff]  ;;  %v37_v1 = vld [vmem:[#allocation2 + $0x8] sm:$0xff]  ;;  %s193_s5 = smov [#allocation7]  }
  0x26   :  { %v38_v2 = vld [vmem:[#allocation2 + $0x10] sm:$0xff]  ;;  %v39_v3 = vld [vmem:[#allocation2 + $0x18] sm:$0xff]  ;;  %v40_v4 = vld [vmem:[#allocation5] sm:$0xff]  ;;  %v65_v28 = vand.u32 2147483647, %v36_v0  ;;  %s100_s6 = sshll.u32 %s193_s5, 4  ;;  %s101_s6 = int_to_ptr.vmem [resolvable:$true] %s100_s6 }
  0x27   :  { %v41_v5 = vld [vmem:[#allocation5 + $0x8] sm:$0xff]  ;;  %v42_v6 = vld [vmem:[#allocation5 + $0x10] sm:$0xff]  ;;  %v43_v7 = vld [vmem:[#allocation5 + $0x18] sm:$0xff]  ;;  %v44_v8 = vsub.f32 %v36_v0, %v40_v4  ;;  %v67_v26 = vand.u32 2147483647, %v38_v2  ;;  %s163_s7 = scalar_lea.vmem %s101_s6, 512  ;;  %p168_p3 = scmp.lt.s32.totalorder %s101_s6, %s101_s6 }
  0x28   :  { %v45_v9 = vsub.f32 %v37_v1, %v41_v5  ;;  %v46_v10 = vsub.f32 %v38_v2, %v42_v6  ;;  %v47_v11 = vsub.f32 %v39_v3, %v43_v7  ;;  %v68_v27 = vand.u32 2147483647, %v39_v3  ;;  %p164_p2 = scmp.ne.s32.totalorder %s101_s6, %s163_s7  ;;  %p169_p4 = scmp.lt.s32.totalorder %s163_s7, %s163_s7 }
  0x29   :  { %v48_v12 = vmul.f32 %v44_v8, %v44_v8  ;;  %v66_v29 = vand.u32 2147483647, %v37_v1  ;;  %v112_v30 = vadd.f32 -1.0, %v67_v26  ;;  %v110_v32 = vadd.f32 -1.0, %v65_v28 }
  0x2a   :  { %v49_v13 = vmul.f32 %v45_v9, %v45_v9  ;;  %v50_v14 = vmul.f32 %v46_v10, %v46_v10  ;;  %v51_v15 = vmul.f32 %v47_v11, %v47_v11  ;;  %v113_v31 = vadd.f32 -1.0, %v68_v27  ;;  %p170_p5 = por %p169_p4, %p168_p3 }
  0x2b   :  { %v111_v33 = vadd.f32 -1.0, %v66_v29  ;;  %v73_v35 = vmax.f32 %v110_v32, 0.0  ;;  %v75_v37 = vmax.f32 %v112_v30, 0.0 }
  0x2c   :  { %v52_v16 = vadd.f32 %v49_v13, %v48_v12  ;;  %v76_v34 = vmax.f32 %v113_v31, 0.0  ;;  %p171_p6 = pnand %p170_p5, %p164_p2 }
  0x2d   :  { %v74_v36 = vmax.f32 %v111_v33, 0.0  ;;  %v77_v39 = vmul.f32 %v73_v35, %v73_v35  ;;  %v79_v41 = vmul.f32 %v75_v37, %v75_v37 }
  0x2e   :  { %v53_v17 = vadd.f32 %v52_v16, %v50_v14  ;;  %v80_v38 = vmul.f32 %v76_v34, %v76_v34 }
  0x2f   :  { %v78_v40 = vmul.f32 %v74_v36, %v74_v36  ;;  %v81_v42 = vmul.f32 10.0, %v77_v39  ;;  %v83_v44 = vmul.f32 10.0, %v79_v41 }
  0x30   :  { %v54_v18 = vadd.f32 %v53_v17, %v51_v15  ;;  %v84_v45 = vmul.f32 10.0, %v80_v38 }
  0x31   :  { %v82_v43 = vmul.f32 10.0, %v78_v40 }
  0x32   :  { %55 = vadd.xlane.f32.xlu0 %v54_v18 }
  0xbf   :  { %v56_v19 = vpop.xlane.xlu0 %55 }
  0xc0   :  { %v57_v20 = vrot.slane %v56_v19, 4 }
  0xc2   :  { %v58_v21 = vadd.f32 %v57_v20, %v56_v19 }
  0xc4   :  { %v59_v22 = vrot.slane %v58_v21, 2 }
  0xc6   :  { %v60_v23 = vadd.f32 %v59_v22, %v58_v21 }
  0xc8   :  { %v61_v24 = vrot.slane %v60_v23, 1 }
  0xca   :  { %v62_v25 = vadd.f32 %v61_v24, %v60_v23 }
  0xcc   :  { %114 = vpush %v62_v25 }
  0xfd   :  { %s115_s1 = spop %114 }
  0xfe   :  { %s64_s4 = smul.f32 0.00048828125, %s115_s1 }
 0x100   :  { %v85_v46 = vstv %s64_s4 }
 0x101   :  { %v86_v47 = vadd.f32 %v85_v46, %v81_v42  ;;  %v87_v48 = vadd.f32 %v85_v46, %v82_v43  ;;  %v88_v49 = vadd.f32 %v85_v46, %v83_v44  ;;  %v89_v50 = vadd.f32 %v85_v46, %v84_v45 }
 0x103   :  { %90 = vst [vmem:[#allocation7] sm:$0xff] %v86_v47  ;;  %91 = vst [vmem:[#allocation7 + $0x8] sm:$0xff] %v87_v48 }
 0x104   :  { %92 = vst [vmem:[#allocation7 + $0x10] sm:$0xff] %v88_v49  ;;  %93 = vst [vmem:[#allocation7 + $0x18] sm:$0xff] %v89_v50 }
 0x105   :  { %174 = shalt.err (!%p171_p6)
}
 0x106   :  { %s175_s10 = scalar_lea.hbm %s247_s2, 512 }
 0x107   :  { %p176_p7 = scmp.ne.s32.totalorder %s247_s2, %s175_s10  ;;  %p179_p8 = scmp.lt.u32.totalorder %s175_s10, %s247_s2 }
 0x109   :  { %p181_p9 = pnand %p179_p8, %p176_p7 }
 0x10b   :  { %184 = shalt.err (!%p181_p9)
}
 0x10c   :  { %103 = dma.vmem_to_hbm [thread:$0]  %s101_s6, 512, %s247_s2, [#allocation4]  }
 0x10d   :  { %189 = dma.done.wait [#allocation4], 512  }
 0x10e   :  { %190 = vsyncadd [#allocation4], 4294966784 }
 0x10f   :  { %107 = vsyncpa [#allocation3], 1 }
 0x110   :  { %108 = vsyncpa [#allocation6], 1 }
 0x111   :  { %109 = vsyncpa [#allocation4], 1 }

</bundles_post_ra>
